<compile_context>
chip_gen: v5e
topology: v5e:2x2
jax: 0.10.0
libtpu: 0.0.40
codegen_flags: <defaults>
</compile_context>

<pallas_src>
import numpy as np
import jax
import jax.numpy as jnp
from jax.experimental import pallas as pl
from jax.experimental.pallas import tpu as pltpu  # noqa: F401  (TPU backend)


# ----------------------------- Pallas kernel ------------------------------ #
def _packed_embed_kernel(x_ref, w_ref, o_ref):
    # Single MXU pass: block-diagonal packed activations @ stacked weights
    # (bias rows folded in via indicator columns). One dot, one store.
    o_ref[...] = jnp.dot(
        x_ref[...], w_ref[...], preferred_element_type=jnp.float32
    ).astype(o_ref.dtype)


# --------------------- parameter prep (NOT in hot path) -------------------- #
def prepare_packed_weights(w_m, b_m, w_d, b_d):
    """Pack weights/biases once at init time.

    Layout (K_pack = m_d + d_d + 2 rounded up to a multiple of 8):
      rows [0, m_d)        : w_m   (m_d, d_h)
      rows [m_d, m_d+d_d)  : w_d   (d_d, d_h)
      row  m_d+d_d         : b_m
      row  m_d+d_d+1       : b_d
      remaining rows       : zeros
    """
    m_d, d_h = w_m.shape
    d_d = w_d.shape[0]
    assert w_d.shape[1] == d_h
    k_real = m_d + d_d + 2
    k_pack = ((k_real + 7) // 8) * 8
    w = np.zeros((k_pack, d_h), dtype=np.float32)
    w[:m_d] = np.asarray(w_m, dtype=np.float32)
    w[m_d:m_d + d_d] = np.asarray(w_d, dtype=np.float32)
    w[m_d + d_d] = np.asarray(b_m, dtype=np.float32)
    w[m_d + d_d + 1] = np.asarray(b_d, dtype=np.float32)
    return jnp.asarray(w)


# ------------------------- fused device-side path -------------------------- #
@jax.jit
def fused_embedding(m_sim, d_sim, w_pack):
    """(m_sim @ w_m + b_m, d_sim @ w_d + b_d) via one packed Pallas matmul.

    m_sim: (n_m, m_d), d_sim: (n_d, d_d), w_pack: (K_pack, d_h) as produced by
    prepare_packed_weights.  Everything here (pack X, pallas_call, row split)
    is traced under a single jit -> one XLA dispatch.
    """
    n_m, m_d = m_sim.shape
    n_d, d_d = d_sim.shape
    k_pack, d_h = w_pack.shape
    m_rows = n_m + n_d

    # Block-diagonal activation packing + bias indicator columns.
    x = jnp.zeros((m_rows, k_pack), dtype=jnp.float32)
    x = x.at[:n_m, :m_d].set(m_sim.astype(jnp.float32))
    x = x.at[n_m:, m_d:m_d + d_d].set(d_sim.astype(jnp.float32))
    x = x.at[:n_m, m_d + d_d].set(1.0)       # selects the b_m row of w_pack
    x = x.at[n_m:, m_d + d_d + 1].set(1.0)   # selects the b_d row of w_pack

    cost = pl.CostEstimate(
        flops=2 * m_rows * k_pack * d_h,
        transcendentals=0,
        bytes_accessed=4 * (m_rows * k_pack + k_pack * d_h + m_rows * d_h),
    )

    # Single grid step; every operand is one full-array VMEM block.
    out = pl.pallas_call(
        _packed_embed_kernel,
        out_shape=jax.ShapeDtypeStruct((m_rows, d_h), jnp.float32),
        grid_spec=pl.GridSpec(
            grid=(1,),
            in_specs=[
                pl.BlockSpec((m_rows, k_pack), lambda i: (0, 0)),  # packed X
                pl.BlockSpec((k_pack, d_h), lambda i: (0, 0)),     # packed W
            ],
            out_specs=pl.BlockSpec((m_rows, d_h), lambda i: (0, 0)),
        ),
        cost_estimate=cost,
    )(x, w_pack)

    return out[:n_m], out[n_m:]


# ------------------------- host-side glue (no Pallas) ---------------------- #
def get_all_the_samplest(association_m, neg_ratio, rng):
    # Data-dependent shapes (nonzero / randint) -> done with numpy, mirroring
    # what the torch code does with its own tensors.
    pos = np.argwhere(association_m != 0)                     # (P, 2)
    neg = np.argwhere(association_m == 0)                     # (Q, 2)
    pos_labels = np.ones((pos.shape[0], 1), dtype=np.int64)
    neg_labels = np.zeros((neg.shape[0], 1), dtype=np.int64)
    num_neg = pos.shape[0] * neg_ratio
    sel = rng.integers(0, neg.shape[0], size=(num_neg,))
    final_ids = np.concatenate([pos, neg[sel]], axis=0)
    final_labels = np.concatenate([pos_labels, neg_labels[sel]], axis=0)
    return final_ids, final_labels


def data_process_forward(m_sim, d_sim, association_m, w_pack, neg_ratio, rng):
    """Mirror of Data_Process.forward().

    Note: no eager .astype / pad here — all device-side prep happens inside
    the jitted fused_embedding so the forward issues exactly one dispatch.
    """
    final_ids, final_labels = get_all_the_samplest(association_m, neg_ratio, rng)
    m_embed, d_embed = fused_embedding(m_sim, d_sim, w_pack)
    return final_ids, final_labels, m_embed, d_embed


# --------------------------------- main ------------------------------------ #
if __name__ == "__main__":
    # Small, deterministic problem sizes implied by the module:
    #   m_sim: (n_m, m_d) similarity matrix, d_sim: (n_d, d_d), hidden d_h.
    n_m, m_d = 16, 16
    n_d, d_d = 8, 8
    d_h = 32
    neg_ratio = 1

    key = jax.random.PRNGKey(0)
    k1, k2, k3, k4, k5, k6 = jax.random.split(key, 6)

    # TODO(synk): SimilarityFusion.calculate_fusion is not provided; synthesize
    # symmetric fused similarity matrices deterministically instead.
    m_raw = jax.random.uniform(k1, (n_m, m_d), dtype=jnp.float32)
    m_sim = 0.5 * (m_raw + m_raw.T)
    d_raw = jax.random.uniform(k2, (n_d, d_d), dtype=jnp.float32)
    d_sim = 0.5 * (d_raw + d_raw.T)

    # TODO(synk): original code does np.loadtxt(association_m_dir); synthesize a
    # deterministic binary association matrix in-script instead.
    assoc = np.array(
        jax.random.bernoulli(k3, 0.2, (n_m, n_d)).astype(jnp.int32))

    # nn.Linear parameters (deterministic init). PyTorch weight is (out, in);
    # we store the transposed (in, out) layout used by the kernel.
    params = {
        "w_m": jax.random.normal(k4, (m_d, d_h), dtype=jnp.float32) * 0.1,
        "b_m": jax.random.normal(k5, (d_h,), dtype=jnp.float32) * 0.01,
        "w_d": jax.random.normal(k6, (d_d, d_h), dtype=jnp.float32) * 0.1,
        "b_d": jnp.zeros((d_h,), dtype=jnp.float32),
    }

    # Weight packing is hoisted out of the hot path (done once).
    w_pack = prepare_packed_weights(
        params["w_m"], params["b_m"], params["w_d"], params["b_d"])

    rng = np.random.default_rng(0)
    final_ids, final_labels, m_embed, d_embed = data_process_forward(
        m_sim, d_sim, assoc, w_pack, neg_ratio, rng)

    m_embed = jax.block_until_ready(m_embed)
    d_embed = jax.block_until_ready(d_embed)

    # Correctness check against plain-JAX reference.
    m_ref = m_sim @ params["w_m"] + params["b_m"]
    d_ref = d_sim @ params["w_d"] + params["b_d"]
    assert np.allclose(np.array(m_embed), np.array(m_ref), atol=1e-5)
    assert np.allclose(np.array(d_embed), np.array(d_ref), atol=1e-5)
    assert final_ids.shape[0] == final_labels.shape[0]
    assert m_embed.shape == (n_m, d_h) and d_embed.shape == (n_d, d_h)

    print("KERNEL_OK")
</pallas_src>

<mosaic_0001>
module attributes {stable_mosaic.version = 11 : i64} {
  func.func @_packed_embed_kernel(%arg0: i32, %arg1: memref<24x32xf32, #tpu.memory_space<vmem>>, %arg2: memref<32x32xf32, #tpu.memory_space<vmem>>, %arg3: memref<24x32xf32, #tpu.memory_space<vmem>>) attributes {dimension_semantics = [#tpu.dimension_semantics<arbitrary>], iteration_bounds = array<i64: 1>, scalar_prefetch = 0 : i64, scratch_operands = 0 : i64, tpu.core_type = #tpu.core_type<tc>, window_params = [{pipeline_mode = #tpu.pipeline_mode<synchronous>, transform_indices = @transform_0, window_bounds = array<i64: 24, 32>}, {pipeline_mode = #tpu.pipeline_mode<synchronous>, transform_indices = @transform_1, window_bounds = array<i64: 32, 32>}, {pipeline_mode = #tpu.pipeline_mode<synchronous>, transform_indices = @transform_2, window_bounds = array<i64: 24, 32>}]} {
    %c0 = arith.constant 0 : index
    %c0_0 = arith.constant 0 : index
    %0 = vector.load %arg1[%c0, %c0_0] : memref<24x32xf32, #tpu.memory_space<vmem>>, vector<24x32xf32>
    %c0_1 = arith.constant 0 : index
    %c0_2 = arith.constant 0 : index
    %1 = vector.load %arg2[%c0_1, %c0_2] : memref<32x32xf32, #tpu.memory_space<vmem>>, vector<32x32xf32>
    %cst = arith.constant dense<0.000000e+00> : vector<24x32xf32>
    %2 = tpu.matmul %0, %1, %cst {dimension_numbers = #tpu.dot_dimension_numbers<[1], [0], [0], [1], [0, 0, 1, 1], [], []>} : vector<24x32xf32>, vector<32x32xf32>, vector<24x32xf32> -> vector<24x32xf32>
    %c0_3 = arith.constant 0 : index
    %c0_4 = arith.constant 0 : index
    %3 = vector.load %arg3[%c0_3, %c0_4] : memref<24x32xf32, #tpu.memory_space<vmem>>, vector<24x32xf32>
    tpu.vector_store %arg3[%c0_3, %c0_4], %2 {strides = array<i32>} : memref<24x32xf32, #tpu.memory_space<vmem>>, vector<24x32xf32>,
    return
  }
  func.func @transform_0(%arg0: i32) -> (i32, i32) {
    %c0_i32 = arith.constant 0 : i32
    %c0_i32_0 = arith.constant 0 : i32
    %c0_i32_1 = arith.constant 0 : i32
    return %c0_i32, %c0_i32_0 : i32, i32
  }
  func.func @transform_1(%arg0: i32) -> (i32, i32) {
    %c0_i32 = arith.constant 0 : i32
    %c0_i32_0 = arith.constant 0 : i32
    %c0_i32_1 = arith.constant 0 : i32
    return %c0_i32, %c0_i32_0 : i32, i32
  }
  func.func @transform_2(%arg0: i32) -> (i32, i32) {
    %c0_i32 = arith.constant 0 : i32
    %c0_i32_0 = arith.constant 0 : i32
    %c0_i32_1 = arith.constant 0 : i32
    return %c0_i32, %c0_i32_0 : i32, i32
  }
}

</mosaic_0001>

<bundles_post_ra>
// kernel: fused_embedding.1
= control target key start
LH: loop header
LB: loop body
LE: loop exit
PB: predicated region body
PF: predicated region fallthrough
CT: control target
= control target key end

     0   :  { %vm18_vm0 = vcmask 261120   ;;  %s123_s1 = inlined_call_operand.vmem [shape: f32[32,32], index: 1, kind: input, shape index: {}]   ;;  %s124_s0 = inlined_call_operand.vmem [shape: f32[24,32], index: 0, kind: input, shape index: {}]   ;;  %s125_s2 = inlined_call_operand.vmem [shape: f32[24,32], index: 2, kind: output, shape index: {}]  }
   0x1   :  { %v17_v0 = vld [vmem:[%s123_s1 + $0x18] sm:$0xff]  ;;  %v16_v1 = vld [vmem:[%s123_s1 + $0x10] sm:$0xff]  ;;  %v15_v2 = vld [vmem:[%s123_s1 + $0x8] sm:$0xff] }
   0x2   :  { %65 = vmatpush.msra.mxu2 %v17_v0  ;;  %40 = vmatpush.msra.mxu0 %v17_v0  ;;  %v14_v3 = vld [vmem:[%s123_s1] sm:$0xff]  ;;  %v13_v4 = vld [vmem:[%s124_s0 + $0x10] sm:$0xff]  ;;  %v12_v6 = vld [vmem:[%s124_s0 + $0x8] sm:$0xff] }
   0x3   :  { %64 = vmatpush.msra.mxu1 %v17_v0  ;;  %v11_v5 = vld [vmem:[%s124_s0] sm:$0xff] }
   0x4   :  { %67 = vmatpush.msra.mxu2 %v16_v1  ;;  %41 = vmatpush.msra.mxu0 %v16_v1 }
   0x5   :  { %66 = vmatpush.msra.mxu1 %v16_v1 }
   0x6   :  { %69 = vmatpush.msra.mxu2 %v15_v2  ;;  %42 = vmatpush.msra.mxu0 %v15_v2 }
   0x7   :  { %68 = vmatpush.msra.mxu1 %v15_v2 }
   0x8   :  { %71 = vmatpush.msra.mxu2 %v14_v3  ;;  %43 = vmatpush.msra.mxu0 %v14_v3 }
   0x9   :  { %63 = vmatmul.msk.f32.vlgmr.msra.gmra.mxu2 %vm18_vm0, %v13_v4  ;;  %70 = vmatpush.msra.mxu1 %v14_v3 }
   0xa   :  { %61 = vmatmul.msk.f32.vlgmr.msra.gmra.mxu0 %vm18_vm0, %v11_v5  ;;  %62 = vmatmul.msk.f32.vlgmr.msra.gmra.mxu1 %vm18_vm0, %v12_v6 }
  0x87   :  { %v45_v7 = vpop.f32.mrf.mxu0  ;;  %v48_v8 = vpop.f32.mrf.mxu1 }
  0x88   :  { %54 = vst.msk [vmem:[%s125_s2] sm:$0xff] %vm18_vm0, %v45_v7 }
  0x89   :  { %55 = vst.msk [vmem:[%s125_s2 + $0x8] sm:$0xff] %vm18_vm0, %v48_v8 }
  0x8c   :  { %v51_v9 = vpop.f32.mrf.mxu2 }
  0x8d   :  { %56 = vst.msk [vmem:[%s125_s2 + $0x10] sm:$0xff] %vm18_vm0, %v51_v9 }

</bundles_post_ra>
